<compile_context>
chip_gen: v5e
topology: v5e:2x2
jax: 0.10.0
libtpu: 0.0.40
codegen_flags: <defaults>
</compile_context>

<pallas_src>
import functools

import jax
import jax.numpy as jnp
from jax.experimental import pallas as pl
from jax.experimental.pallas import tpu as pltpu

_LANE = 128
_SUBLANE = 8


def _round_up(x, m):
    return ((x + m - 1) // m) * m


def _aa_embedding_kernel(x_ref, w_ref, b_ref, o_ref):
    # x_ref: (TB, C, L) native-layout batch slab (contiguous in HBM)
    # w_ref: (C, C)     1x1-conv weight (same block every grid step)
    # b_ref: (1, C, 1)  bias
    # o_ref: (TB, C, L) output slab
    x = x_ref[...]
    tb = x.shape[0]
    # Broadcast W along the batch dim (leading-dim broadcast, VMEM-only) and
    # run one batched MXU matmul over the whole block.
    w = jnp.broadcast_to(w_ref[...], (tb,) + w_ref.shape)
    y = jnp.einsum("boc,bcl->bol", w, x, preferred_element_type=jnp.float32)
    o_ref[...] = (y + b_ref[...]).astype(o_ref.dtype)


@functools.partial(jax.jit, static_argnames=("target_block_bytes",))
def layer_aa_embedding(x, weight, bias, *, target_block_bytes=4 * 1024 * 1024):
    """Pallas implementation of LayerAaEmbedding.forward (1x1 Conv1d).

    Args:
      x:      (N, C, L) float32, NCL layout (same as torch Conv1d input).
      weight: (C, C, 1) float32, torch Conv1d weight (out, in, kernel=1).
      bias:   (C,)      float32, torch Conv1d bias.

    Returns:
      (N, C, L) float32, same as torch Conv1d output.
    """
    N, C, L = x.shape
    w2d = weight.reshape(C, C)
    b3d = bias.reshape(1, C, 1)
    itemsize = x.dtype.itemsize

    # Batch-block size: target ~target_block_bytes of lane-padded VMEM per
    # buffer (last dim pads to 128 lanes, second-last to 8 sublanes), then
    # clamp so the grid has at least 2 blocks whenever N >= 2 so v7x's second
    # TensorCore is used.
    padded_row_bytes = _round_up(C, _SUBLANE) * _round_up(L, _LANE) * itemsize
    tb_budget = max(1, target_block_bytes // padded_row_bytes)
    tb_two_blocks = max(1, (N + 1) // 2)
    tb = max(1, min(tb_budget, tb_two_blocks, N))
    grid = (pl.cdiv(N, tb),)

    # Advisory cost estimate: now matches real traffic (no wrapper transposes
    # or pad materialisation).
    cost = pl.CostEstimate(
        flops=2 * N * C * C * L,
        transcendentals=0,
        bytes_accessed=2 * N * C * L * itemsize + C * C * itemsize + C * itemsize,
    )

    return pl.pallas_call(
        _aa_embedding_kernel,
        out_shape=jax.ShapeDtypeStruct((N, C, L), x.dtype),
        grid=grid,
        in_specs=[
            pl.BlockSpec((tb, C, L), lambda i: (i, 0, 0)),  # x: contiguous batch slab
            pl.BlockSpec((C, C), lambda i: (0, 0)),         # weight: constant block
            pl.BlockSpec((1, C, 1), lambda i: (0, 0, 0)),   # bias: constant block
        ],
        out_specs=pl.BlockSpec((tb, C, L), lambda i: (i, 0, 0)),
        compiler_params=pltpu.CompilerParams(
            dimension_semantics=("parallel",),   # shard batch blocks across v7x's 2 TCs
            vmem_limit_bytes=48 * 1024 * 1024,   # dbuf'd in/out + temporaries << 48 MiB
        ),
        cost_estimate=cost,
    )(x, w2d, b3d)


def _reference(x, weight, bias):
    # Pure-JAX reference of the 1x1 Conv1d: contraction over the channel axis.
    w2d = weight.reshape(weight.shape[0], weight.shape[1])
    return jnp.einsum("oc,ncl->nol", w2d, x) + bias[None, :, None]


if __name__ == "__main__":
    # Small shapes consistent with the module: x in NCL layout for Conv1d,
    # with C = input_shape[-2] channels.
    N, C, L = 2, 16, 32

    key = jax.random.PRNGKey(0)
    kx, kw, kb = jax.random.split(key, 3)

    x = jax.random.normal(kx, (N, C, L), dtype=jnp.float32)
    # Synthetic parameters with torch Conv1d(C, C, kernel_size=1) shapes.
    weight = jax.random.normal(kw, (C, C, 1), dtype=jnp.float32) * 0.1
    bias = jax.random.normal(kb, (C,), dtype=jnp.float32) * 0.1

    out = layer_aa_embedding(x, weight, bias)
    out = jax.block_until_ready(out)

    ref = _reference(x, weight, bias)
    assert out.shape == (N, C, L)
    assert jnp.allclose(out, ref, atol=1e-4, rtol=1e-4), "mismatch vs reference"

    # TODO(synk): the module stores a `dropout` rate in __init__ but never
    # applies it in forward(), so it is intentionally omitted here.
    print("KERNEL_OK")
</pallas_src>

<mosaic_0001>
module attributes {stable_mosaic.version = 11 : i64} {
  func.func @_aa_embedding_kernel(%arg0: i32, %arg1: memref<1x16x32xf32, #tpu.memory_space<vmem>>, %arg2: memref<16x16xf32, #tpu.memory_space<vmem>>, %arg3: memref<1x16x1xf32, #tpu.memory_space<vmem>>, %arg4: memref<1x16x32xf32, #tpu.memory_space<vmem>>) attributes {dimension_semantics = [#tpu.dimension_semantics<parallel>], iteration_bounds = array<i64: 2>, scalar_prefetch = 0 : i64, scratch_operands = 0 : i64, tpu.core_type = #tpu.core_type<tc>, window_params = [{transform_indices = @transform_0, window_bounds = array<i64: 1, 16, 32>}, {pipeline_mode = #tpu.pipeline_mode<synchronous>, transform_indices = @transform_1, window_bounds = array<i64: 16, 16>}, {pipeline_mode = #tpu.pipeline_mode<synchronous>, transform_indices = @transform_2, window_bounds = array<i64: 1, 16, 1>}, {transform_indices = @transform_3, window_bounds = array<i64: 1, 16, 32>}]} {
    %c0 = arith.constant 0 : index
    %c0_0 = arith.constant 0 : index
    %c0_1 = arith.constant 0 : index
    %0 = vector.load %arg1[%c0, %c0_0, %c0_1] : memref<1x16x32xf32, #tpu.memory_space<vmem>>, vector<1x16x32xf32>
    %c0_2 = arith.constant 0 : index
    %c0_3 = arith.constant 0 : index
    %1 = vector.load %arg2[%c0_2, %c0_3] : memref<16x16xf32, #tpu.memory_space<vmem>>, vector<16x16xf32>
    %2 = vector.shape_cast %1 : vector<16x16xf32> to vector<1x16x16xf32>
    "tpu.trace_start"() <{level = 10 : i32, message = "boc,bcl->bol"}> : () -> ()
    %cst = arith.constant dense<0.000000e+00> : vector<1x16x32xf32>
    %3 = tpu.matmul %2, %0, %cst {dimension_numbers = #tpu.dot_dimension_numbers<[2], [1], [1], [2], [0, 0, 0, 1, 1, 2], [0], [0]>} : vector<1x16x16xf32>, vector<1x16x32xf32>, vector<1x16x32xf32> -> vector<1x16x32xf32>
    "tpu.trace_stop"() : () -> ()
    %c0_4 = arith.constant 0 : index
    %c0_5 = arith.constant 0 : index
    %c0_6 = arith.constant 0 : index
    %4 = vector.load %arg3[%c0_4, %c0_5, %c0_6] : memref<1x16x1xf32, #tpu.memory_space<vmem>>, vector<1x16x1xf32>
    %5 = vector.broadcast %4 : vector<1x16x1xf32> to vector<1x16x32xf32>
    %6 = arith.addf %3, %5 : vector<1x16x32xf32>
    %c0_7 = arith.constant 0 : index
    %c0_8 = arith.constant 0 : index
    %c0_9 = arith.constant 0 : index
    %7 = vector.load %arg4[%c0_7, %c0_8, %c0_9] : memref<1x16x32xf32, #tpu.memory_space<vmem>>, vector<1x16x32xf32>
    tpu.vector_store %arg4[%c0_7, %c0_8, %c0_9], %6 {strides = array<i32>} : memref<1x16x32xf32, #tpu.memory_space<vmem>>, vector<1x16x32xf32>,
    return
  }
  func.func @transform_0(%arg0: i32) -> (i32, i32, i32) {
    %c0_i32 = arith.constant 0 : i32
    %c0_i32_0 = arith.constant 0 : i32
    %c0_i32_1 = arith.constant 0 : i32
    return %arg0, %c0_i32, %c0_i32_0 : i32, i32, i32
  }
  func.func @transform_1(%arg0: i32) -> (i32, i32) {
    %c0_i32 = arith.constant 0 : i32
    %c0_i32_0 = arith.constant 0 : i32
    %c0_i32_1 = arith.constant 0 : i32
    return %c0_i32, %c0_i32_0 : i32, i32
  }
  func.func @transform_2(%arg0: i32) -> (i32, i32, i32) {
    %c0_i32 = arith.constant 0 : i32
    %c0_i32_0 = arith.constant 0 : i32
    %c0_i32_1 = arith.constant 0 : i32
    %c0_i32_2 = arith.constant 0 : i32
    return %c0_i32, %c0_i32_0, %c0_i32_1 : i32, i32, i32
  }
  func.func @transform_3(%arg0: i32) -> (i32, i32, i32) {
    %c0_i32 = arith.constant 0 : i32
    %c0_i32_0 = arith.constant 0 : i32
    %c0_i32_1 = arith.constant 0 : i32
    return %arg0, %c0_i32, %c0_i32_0 : i32, i32, i32
  }
}

</mosaic_0001>

<bundles_post_ra>
// kernel: layer_aa_embedding.1
= control target key start
LH: loop header
LB: loop body
LE: loop exit
PB: predicated region body
PF: predicated region fallthrough
CT: control target
= control target key end

     0   :  { %8 = vsyncpa [#allocation3], 0  ;;  %s663_s0 = inlined_call_operand.hbm [shape: f32[2,16,32], index: 0, kind: input, shape index: {}]   ;;  %s664_s1 = inlined_call_operand.vmem [shape: f32[16,16], index: 1, kind: input, shape index: {}]   ;;  %s665_s2 = inlined_call_operand.vmem [shape: f32[1,16,1], index: 2, kind: input, shape index: {}]   ;;  %s666_s3 = inlined_call_operand.hbm [shape: f32[2,16,32], index: 3, kind: output, shape index: {}]  }
   0x1   :  { %10 = vsyncpa [#allocation3 + $0x1], 0 }
   0x2   :  { %11 = vsyncpa [#allocation4], 0 }
   0x3   :  { %13 = vsyncpa [#allocation4 + $0x1], 0  ;;  %s524_s12 = smov 0   ;;  %s526_s13 = smov 0  }
   0x4   :  { %s528_s14 = smov 0   ;;  %s530_s15 = smov 0  }
   0x5 LB: > { %s545_s16 = sadd.s32 4294967295, %s497_s15   ;;  %s329_s17 = sadd.s32 4294967294, %s497_s15   ;;  %s497_s15 = sphi %s530_s15, %s676_s15   ;;  %s493_s14 = sphi %s528_s14, %s675_s14   ;;  %s489_s13 = sphi %s526_s13, %s674_s13   ;;  %s485_s12 = sphi %s524_s12, %s673_s12  }
   0x6   : > { %s549_s18 = sadd.s32 1, %s497_s15   ;;  %s26_s19 = sadd.s32 1, %s493_s14 }
   0x7   : > { %s23_s20 = ssub.s32 %s497_s15, %s549_s18  ;;  %p33_p0 = scmp.ne.s32.totalorder %s493_s14, %s489_s13 }
   0x8   : > { %p24_p1 = scmp.eq.s32.totalorder %s23_s20, 0  ;;  %p34_p2 = scmp.eq.s32.totalorder %s497_s15, 0 }
   0x9   : > { %p39_p3 = scmp.ne.s32.totalorder %s489_s13, %s485_s12  ;;  %p40_p4 = scmp.eq.s32.totalorder %s545_s16, 0 }
   0xa   : > { %s561_s21 = scalar_select %p24_p1, %s493_s14, %s26_s19  }
   0xb   : > { %p563_p5 = por %p34_p2, %p33_p0  ;;  %p567_p6 = por %p40_p4, %p39_p3 }
   0xc   : > { %p105_p7 = scmp.eq.s32.totalorder %s545_s16, 1  ;;  %p111_p8 = scmp.eq.s32.totalorder %s329_s17, 1 }
   0xd   : > { %p361_p10 = scmp.lt.s32.totalorder %s497_s15, 2  ;;  %s137_s26 = sand.u32 1, %s493_s14  }
   0xe   : > { %p574_p11 = por %p105_p7, %p33_p0  ;;  %p578_p12 = por %p111_p8, %p39_p3 }
   0xf   : > { %s345_s27 = sshll.u32 %s497_s15, 4  ;;  %s332_s28 = sshll.u32 %s137_s26, 4 }
  0x10   : > { %s146_s4 = scalar_lea.hbm %s663_s0, %s345_s27  ;;  %s141_s6 = scalar_lea.vmem [#allocation2], %s332_s28 }
  0x11   : > { %s147_s5 = sshll.u32 %s146_s4, 4  ;;  %s149_s7 = sshll.u32 %s141_s6, 4  ;;  %s148_s5 = int_to_ptr.hbm [resolvable:$true] %s147_s5  ;;  %s150_s7 = int_to_ptr.vmem [resolvable:$true] %s149_s7 }
  0x12   : > { %p589_p13 = pnand %p361_p10, %p563_p5  ;;  %p335_p0 = scmp.ge.s32.totalorder %s497_s15, 1 }
  0x13   : > { %p157_p1 = scmp.lt.s32.totalorder %s497_s15, 3  ;;  %s138_s9 = scalar_lea.sflag [#allocation3], %s137_s26 }
  0x14   : > { %s401_s10 = sshra.s32 %s148_s5, 4  ;;  %p405_p3 = pneg %p589_p13  ;;  %s402_s10 = int_to_ptr.hbm [resolvable:$true] %s401_s10 }
  0x15   : > { %s403_s11 = scalar_lea.hbm %s402_s10, 16  ;;  %s408_s20 = scalar_lea.hbm %s663_s0, 32 }
  0x16   : > { %p404_p2 = scmp.ne.s32.totalorder %s402_s10, %s403_s11  ;;  %p409_p5 = scmp.lt.s32.totalorder %s402_s10, %s663_s0 }
  0x17   : > { %p410_p8 = scmp.lt.s32.totalorder %s408_s20, %s403_s11 }
  0x18   : > { %p406_p4 = pnand %p405_p3, %p404_p2 }
  0x19   : > { %p411_p10 = por %p410_p8, %p409_p5 }
  0x1a   : > { %p407_p7 = pneg %p406_p4 }
  0x1c   : > { %p412_p9 = pnand %p411_p10, %p407_p7 }
  0x1e   : > { %415 = shalt.err (!%p412_p9)
}
  0x1f   : > { %s499_s26 = smov 128   ;;  %s500_s28 = smov 8  }
  0x20   : > { %356 = dma.hbm_to_vmem [thread:$0]  (!%p589_p13), %s148_s5, 256, %s150_s7, %s138_s9, %s499_s26, %s499_s26, %s500_s28  }
  0x21   : > { %p158_p2 = pnand %p335_p0, %p157_p1 }
  0x22   : > { %s610_s29 = sand.u32 (!%p158_p2), 1, %s489_s13  }
  0x23   : > { %161 = sbr.rel (%p158_p2) target bundleno = 178 (0xb2), region = 32  ;;  %s336_s30 = sshll.u32 (!%p158_p2), %s610_s29, 4 }
  0x24   : > { %s164_s4 = scalar_lea.sflag (!%p158_p2), [#allocation3], %s610_s29  ;;  %s167_s6 = scalar_lea.vmem (!%p158_p2), [#allocation2], %s336_s30 }
  0x28   : > { %476 = dma.done.wait (%p567_p6), %s164_s4, 256  }
  0x29   : > { %478 = vsyncadd (%p567_p6), %s164_s4, 4294967040  ;;  %v501_v0 = vmov 0   ;;  %v195_v1 = vld [vmem:[%s665_s2] sm:$0xff]  ;;  %v192_v2 = vld [vmem:[%s167_s6 + $0x8] sm:$0xff]  ;;  %vm207_vm0 = vcmask 130048   ;;  %s346_s19 = sshll.u32 %s545_s16, 4 }
  0x2a   : > { %400 = vset.pattern.permute.xlu0 %v501_v0  ;;  %v191_v3 = vld [vmem:[%s167_s6] sm:$0xff]  ;;  %228 = vmatpush.msra.mxu0 %v192_v2  ;;  %v194_v5 = vld [vmem:[%s664_s1 + $0x8] sm:$0xff]  ;;  %s252_s27 = scalar_lea.hbm %s666_s3, %s346_s19  ;;  %s190_s26 = scalar_lea.vmem [#allocation5], %s336_s30  ;;  %vm237_vm1 = vcmask 261120  }
  0x2b   : > { %199 = vperm.xlu0 %400, %v195_v1   ;;  %v193_v4 = vld [vmem:[%s664_s1] sm:$0xff]  ;;  %347 = vmatpush.msra.mxu1 %v192_v2  ;;  %v196_v6 = vld [vmem:[%s665_s2 + $0x8] sm:$0xff]  ;;  %s253_s28 = sshll.u32 %s190_s26, 4  ;;  %s255_s4 = sshll.u32 %s252_s27, 4  ;;  %s254_s28 = int_to_ptr.vmem [resolvable:$true] %s253_s28  ;;  %s256_s4 = int_to_ptr.hbm [resolvable:$true] %s255_s4 }
  0x2c   : > { %229 = vmatpush.msra.mxu0 %v191_v3  ;;  %s241_s6 = scalar_lea.sflag [#allocation4], %s610_s29  ;;  %s445_s16 = sshra.s32 %s256_s4, 4  ;;  %s446_s16 = int_to_ptr.hbm [resolvable:$true] %s445_s16 }
  0x2d   : > { %348 = vmatpush.msra.mxu1 %v191_v3  ;;  %338 = vmatmul.msk.f32.vlgmr.msra.gmra.mxu0 %vm207_vm0, %v193_v4  ;;  %s447_s5 = scalar_lea.hbm %s446_s16, 16  ;;  %s451_s8 = scalar_lea.hbm %s666_s3, 32 }
  0x2e   : > { %339 = vmatmul.msk.f32.vlgmr.msra.gmra.mxu1 %vm207_vm0, %v194_v5  ;;  %p448_p6 = scmp.ne.s32.totalorder %s446_s16, %s447_s5  ;;  %p452_p0 = scmp.lt.s32.totalorder %s446_s16, %s666_s3 }
  0x2f   : > { %p453_p1 = scmp.lt.s32.totalorder %s451_s8, %s447_s5 }
  0x30   : > { %p449_p9 = pnand %p448_p6, %p574_p11 }
  0x31   : > { %p454_p3 = por %p453_p1, %p452_p0 }
  0x32   : > { %p450_p13 = pneg %p449_p9 }
  0x33   : > { %204 = vperm.xlu0 %400, %v196_v6  }
  0x34   : > { %p455_p4 = pnand %p454_p3, %p450_p13 }
  0x9d   : > { %v200_v7 = vpop.permute.xlu0 %199 }
  0xa5   : > { %v205_v9 = vpop.permute.xlu0 %204 }
  0xaa   : > { %v231_v8 = vpop.f32.mrf.mxu0 }
  0xab   : > { %v232_v10 = vadd.f32 %v231_v8, %v200_v7  ;;  %v234_v11 = vpop.f32.mrf.mxu1 }
  0xac   : > { %v235_v12 = vadd.f32 %v234_v11, %v205_v9 }
  0xad   : > { %238 = vst.msk [vmem:[%s190_s26] sm:$0xff] %vm237_vm1, %v232_v10 }
  0xae   : > { %239 = vst.msk [vmem:[%s190_s26 + $0x8] sm:$0xff] %vm237_vm1, %v235_v12 }
  0xaf   : > { %458 = shalt.err (!%p455_p4)
}
  0xb0   : > { %s502_s29 = smov 128   ;;  %s503_s23 = smov 8  }
  0xb1   : > { %351 = dma.vmem_to_hbm [thread:$0]  (%p574_p11), %s254_s28, 256, %s256_s4, %s241_s6, %s502_s29, %s502_s29, %s503_s23  }
  0xb2 PF: > { %s270_s11 = sand.u32 1, %s485_s12   ;;  %p672_p7 = scmp.ge.s32.totalorder %s497_s15, 2 }
  0xb3   : > { %s271_s17 = scalar_lea.sflag [#allocation4], %s270_s11 }
  0xb4   : > { %p358_p5 = pnand %p672_p7, %p578_p12 }
  0xb6   : > { %p359_p8 = pneg %p358_p5 }
  0xb8   : > { %480 = dma.done.wait (%p359_p8), %s271_s17, 256  }
  0xb9   : > { %482 = vsyncadd (%p359_p8), %s271_s17, 4294967040  ;;  %p16_p10 = scmp.ge.s32.totalorder %s549_s18, 4   ;;  %s673_s12 = smov %s489_s13 }
  0xba   : > { %s674_s13 = smov %s493_s14  ;;  %s675_s14 = smov %s561_s21 }
  0xbb   : > { %s676_s15 = smov %s549_s18  ;;  %18 = sbr.rel (!%p16_p10) target bundleno = 5 (0x5), region = 77 }
  0xc0   :  { %277 = vsyncpa [#allocation3], 1 }
  0xc1   :  { %279 = vsyncpa [#allocation3 + $0x1], 1 }
  0xc2   :  { %280 = vsyncpa [#allocation4], 1 }
  0xc3   :  { %282 = vsyncpa [#allocation4 + $0x1], 1 }

</bundles_post_ra>
